<compile_context>
chip_gen: v6e
topology: v6e:2x2x1
jax: 0.10.0
libtpu: 0.0.40
codegen_flags: <defaults>
</compile_context>

<pallas_src>
import functools
import math

import jax
import jax.numpy as jnp
from jax import lax
from jax.experimental import pallas as pl
from jax.experimental.pallas import tpu as pltpu

_MASK_VALUE = -10000.0   # Attention.masked_bias in the PyTorch module


# --------------------------------------------------------------------------- #
# small math helpers (traced inside kernels)                                   #
# --------------------------------------------------------------------------- #
def _layer_norm(h, g, b, eps):
    mu = jnp.mean(h, axis=-1, keepdims=True)
    var = jnp.mean((h - mu) ** 2, axis=-1, keepdims=True)   # biased, like nn.LayerNorm
    return (h - mu) * lax.rsqrt(var + eps) * g + b


def _gelu_new(x):
    c0 = jnp.float32(0.044715)
    c1 = jnp.float32(math.sqrt(2.0 / math.pi))
    return 0.5 * x * (1.0 + jnp.tanh(c1 * (x + c0 * x * x * x)))


# --------------------------------------------------------------------------- #
# Pass A: LN1 + QKV projection, head-major bf16 outputs                        #
# --------------------------------------------------------------------------- #
def _qkv_kernel(x_ref, ln1_g_ref, ln1_b_ref, w_qkv_ref, b_qkv_ref,
                q_ref, k_ref, v_ref, *, n_head, eps):
    f32 = jnp.float32
    x = x_ref[...].astype(f32)                                    # (t, D)
    t, D = x.shape
    hd = D // n_head

    ln1 = _layer_norm(x, ln1_g_ref[...].astype(f32), ln1_b_ref[...].astype(f32), eps)
    qkv = jnp.dot(ln1.astype(jnp.bfloat16), w_qkv_ref[...],
                  preferred_element_type=f32) + b_qkv_ref[...]    # (t, 3D) f32

    # Single head split per q/k/v: D-aligned slice, reshape, one major-dim
    # transpose to head-major (H, t, hd).  Done once per token (not per query
    # tile) so the relayout cost is amortized.
    for idx, out_ref in enumerate((q_ref, k_ref, v_ref)):
        part = qkv[:, idx * D:(idx + 1) * D]                      # (t, D)
        part = part.reshape(t, n_head, hd)                        # (t, H, hd)
        out_ref[...] = jnp.transpose(part, (1, 0, 2)).astype(out_ref.dtype)


# --------------------------------------------------------------------------- #
# Pass B: flash causal attention + out-proj + residual + LN2 + MLP             #
# --------------------------------------------------------------------------- #
def _flash_block_kernel(x_ref, q_ref, k_ref, v_ref,
                        w_ap_ref, b_ap_ref, ln2_g_ref, ln2_b_ref,
                        w_fc_ref, b_fc_ref, w_fp_ref, b_fp_ref,
                        o_ref, m_sc, l_sc, acc_sc, *, eps, approx_recip):
    f32 = jnp.float32
    bf16 = jnp.bfloat16
    qi = pl.program_id(1)
    ki = pl.program_id(2)

    @pl.when(ki == 0)
    def _init():
        m_sc[...] = jnp.full(m_sc.shape, -jnp.inf, f32)
        l_sc[...] = jnp.zeros(l_sc.shape, f32)
        acc_sc[...] = jnp.zeros(acc_sc.shape, f32)

    def _online_update(masked):
        q = q_ref[...]                                            # (H, tq, hd) bf16
        k = k_ref[...]                                            # (H, tk, hd) bf16
        v = v_ref[...]
        # Block(..., scale=False)  =>  raw q @ k^T, no 1/sqrt(head_dim).
        s = jnp.einsum('hqd,hkd->hqk', q, k, preferred_element_type=f32)   # (H, tq, tk)
        if masked:
            # Only the diagonal tile needs the causal mask (tq == tk, ki == qi).
            tq_, tk_ = q.shape[1], k.shape[1]
            row = lax.broadcasted_iota(jnp.int32, (tq_, tk_), 0)
            col = lax.broadcasted_iota(jnp.int32, (tq_, tk_), 1)
            s = jnp.where((row >= col)[None], s, jnp.float32(_MASK_VALUE))
        m_prev = m_sc[...]
        m_new = jnp.maximum(m_prev, jnp.max(s, axis=-1, keepdims=True))
        alpha = jnp.exp(m_prev - m_new)
        p = jnp.exp(s - m_new)
        l_sc[...] = alpha * l_sc[...] + jnp.sum(p, axis=-1, keepdims=True)
        acc_sc[...] = alpha * acc_sc[...] + jnp.einsum(
            'hqk,hkd->hqd', p.astype(v.dtype), v, preferred_element_type=f32)
        m_sc[...] = m_new

    @pl.when(ki < qi)               # fully-unmasked KV tiles
    def _body():
        _online_update(masked=False)

    @pl.when(ki == qi)              # diagonal tile == last contributing KV tile
    def _finalize():
        _online_update(masked=True)

        t, D = x_ref.shape
        H, _, hd = acc_sc.shape
        if approx_recip:
            inv_l = pl.reciprocal(l_sc[...], approx=True)         # EUP slot, frees VALU
        else:
            inv_l = 1.0 / l_sc[...]
        ctx = acc_sc[...] * inv_l                                 # (H, t, hd) f32

        # merge_heads + c_proj as ONE K=D MXU matmul: (H,t,hd) -> (t, H*hd) @ (D, D).
        # Avoids any (H, T, D) f32 intermediate and any cross-slab head reduction.
        ctx = jnp.transpose(ctx, (1, 0, 2)).reshape(t, H * hd)
        attn = jnp.dot(ctx.astype(bf16), w_ap_ref[...],
                       preferred_element_type=f32) + b_ap_ref[...]     # (t, D)

        x = x_ref[...].astype(f32)
        h1 = x + attn                                             # residual 1

        ln2 = _layer_norm(h1, ln2_g_ref[...].astype(f32), ln2_b_ref[...].astype(f32), eps)
        ff = jnp.dot(ln2.astype(bf16), w_fc_ref[...],
                     preferred_element_type=f32) + b_fc_ref[...]        # (t, I)
        ff = _gelu_new(ff)
        ff = jnp.dot(ff.astype(bf16), w_fp_ref[...],
                     preferred_element_type=f32) + b_fp_ref[...]        # (t, D)

        o_ref[...] = (h1 + ff).astype(o_ref.dtype)                # residual 2


# --------------------------------------------------------------------------- #
# generation-aware sizing                                                      #
# --------------------------------------------------------------------------- #
def _device_kind():
    try:
        return jax.devices()[0].device_kind.lower()
    except Exception:
        return ""


def _mxu_tile():
    kind = _device_kind()
    # v5e (and older) have 128-wide MXUs; v6e/v7x have 256-wide MXUs.
    return 128 if ("v5" in kind or "v4" in kind or "v3" in kind) else 256


def _vmem_cap():
    kind = _device_kind()
    # v7x: 64 MiB physical VMEM per TensorCore -> stay well under.
    # v5e/v6e: 128 MiB physical -> allow up to ~100 MiB.
    return (56 << 20) if "v7" in kind else (100 << 20)


def _pick_tile(T, pref):
    """Largest multiple-of-8 divisor of T that is <= pref; falls back to T."""
    best = None
    t = 8
    while t <= min(pref, T):
        if T % t == 0:
            best = t
        t += 8
    return best if best is not None else T


def _clamp_vmem(est, cap):
    return int(max(16 << 20, min(cap, est)))


def _vmem_limit_qkv(tq, D, cap):
    bf, f4 = 2, 4
    weights = D * 3 * D * bf + 5 * D * f4                         # w_qkv bf16 + ln/bias f32
    tiles = 2 * tq * D * f4 + 2 * 3 * tq * D * bf                 # x in + q/k/v out, 2-buffered
    transients = 3 * tq * 3 * D * f4 + 4 * tq * D * f4
    return _clamp_vmem(2 * weights + tiles + transients + (2 << 20), cap)


def _vmem_limit_block(tq, tk, D, I, H, cap):
    bf, f4 = 2, 4
    hd = D // H
    weights = (D * D + 2 * D * I) * bf + (4 * D + I) * f4         # single-buffered
    tiles = 2 * (2 * tq * D * f4 + (tq + 2 * tk) * D * bf)        # x/out f32 + q/k/v bf16, 2-buffered
    scratch = H * tq * (hd + 2) * f4                              # m, l, acc
    transients = 3 * H * tq * tk * f4 + 3 * tq * I * f4 + 8 * tq * D * f4
    return _clamp_vmem(weights + tiles + scratch + transients + (2 << 20), cap)


# --------------------------------------------------------------------------- #
# host-side wrappers                                                           #
# --------------------------------------------------------------------------- #
def prepare_params(params):
    """One-time host-side prep: cast matmul weights to bf16 (MXU-native, half the
    DMA / resident VMEM).  Call once at parameter-load time, not per forward."""
    bf16 = jnp.bfloat16
    prepared = dict(params)
    for name in ("w_qkv", "w_attn_proj", "w_fc", "w_mlp_proj"):
        prepared[name] = params[name].astype(bf16)
    return prepared


def gpt2_block_forward(x, p, *, n_head, eps=1e-5, seq_tile=None, approx_recip=True):
    """x: (B, T, D) float32.  p: output of prepare_params().  Returns (B, T, D)."""
    B, T, D = x.shape
    assert D % n_head == 0
    hd = D // n_head
    I = p["w_fc"].shape[1]
    tq = _pick_tile(T, seq_tile or _mxu_tile())
    tk = tq                                  # diagonal-tile causal mask assumes tq == tk
    nq = T // tq
    cap = _vmem_cap()

    def _const_spec(arr, single_buffer):
        zero = (0,) * arr.ndim
        imap = lambda *_: zero
        if single_buffer:
            # Constant blocks never change index; single-buffer them so the whole
            # weight set is resident once (load-bearing on v7x's 64 MiB VMEM).
            return pl.BlockSpec(arr.shape, imap, pipeline_mode=pl.Buffered(1))
        return pl.BlockSpec(arr.shape, imap)

    def run(single_buffer_weights):
        # ---- pass A: LN1 + QKV projection ---------------------------------
        qkv_in = (x, p["ln1_g"], p["ln1_b"], p["w_qkv"], p["b_qkv"])
        seq_spec_a = pl.BlockSpec((None, tq, D), lambda b, i: (b, i, 0))
        head_spec_a = pl.BlockSpec((None, n_head, tq, hd), lambda b, i: (b, 0, i, 0))
        q_hm, k_hm, v_hm = pl.pallas_call(
            functools.partial(_qkv_kernel, n_head=n_head, eps=eps),
            out_shape=tuple(jax.ShapeDtypeStruct((B, n_head, T, hd), jnp.bfloat16)
                            for _ in range(3)),
            grid=(B, nq),
            in_specs=[seq_spec_a] + [_const_spec(a, single_buffer_weights)
                                     for a in qkv_in[1:]],
            out_specs=(head_spec_a, head_spec_a, head_spec_a),
            compiler_params=pltpu.CompilerParams(
                dimension_semantics=("parallel", "parallel"),
                vmem_limit_bytes=_vmem_limit_qkv(tq, D, cap)),
        )(*qkv_in)

        # ---- pass B: flash attention + out-proj + residual + LN2 + MLP -----
        blk_in = (x, q_hm, k_hm, v_hm,
                  p["w_attn_proj"], p["b_attn_proj"], p["ln2_g"], p["ln2_b"],
                  p["w_fc"], p["b_fc"], p["w_mlp_proj"], p["b_mlp_proj"])
        x_spec = pl.BlockSpec((None, tq, D), lambda b, qi, ki: (b, qi, 0))
        q_spec = pl.BlockSpec((None, n_head, tq, hd), lambda b, qi, ki: (b, 0, qi, 0))
        # Causal skip: for ki > qi the KV tile is fully masked; clamp the block
        # index so Pallas dedupes the DMA (same block as previous step) while the
        # kernel skips the compute via pl.when.
        kv_spec = pl.BlockSpec((None, n_head, tk, hd),
                               lambda b, qi, ki: (b, 0, jnp.minimum(ki, qi), 0))
        out_spec = pl.BlockSpec((None, tq, D), lambda b, qi, ki: (b, qi, 0))
        return pl.pallas_call(
            functools.partial(_flash_block_kernel, eps=eps, approx_recip=approx_recip),
            out_shape=jax.ShapeDtypeStruct((B, T, D), x.dtype),
            grid=(B, nq, nq),
            in_specs=[x_spec, q_spec, kv_spec, kv_spec]
                     + [_const_spec(a, single_buffer_weights) for a in blk_in[4:]],
            out_specs=out_spec,
            scratch_shapes=[pltpu.VMEM((n_head, tq, 1), jnp.float32),   # m
                            pltpu.VMEM((n_head, tq, 1), jnp.float32),   # l
                            pltpu.VMEM((n_head, tq, hd), jnp.float32)], # acc
            compiler_params=pltpu.CompilerParams(
                dimension_semantics=("parallel", "parallel", "arbitrary"),
                vmem_limit_bytes=_vmem_limit_block(tq, tk, D, I, n_head, cap)),
        )(*blk_in)

    try:
        return run(True)
    except (pltpu.LoweringException, NotImplementedError, TypeError, ValueError):
        # Narrow fallback: only if this build rejects pl.Buffered(1) on the outer
        # pipeline.  Genuine errors re-raise identically from the retry below.
        return run(False)


# --------------------------------------------------------------------------- #
# parameter init + pure-JAX reference (mirrors the PyTorch Block, eval mode)   #
# --------------------------------------------------------------------------- #
def init_params(key, n_embd, n_inner):
    D, I = n_embd, n_inner
    ks = jax.random.split(key, 4)
    std = 0.02
    return {
        "ln1_g": jnp.ones((1, D), jnp.float32),
        "ln1_b": jnp.zeros((1, D), jnp.float32),
        "w_qkv": std * jax.random.normal(ks[0], (D, 3 * D), jnp.float32),     # Conv1D(3*D, D)
        "b_qkv": jnp.zeros((1, 3 * D), jnp.float32),
        "w_attn_proj": std * jax.random.normal(ks[1], (D, D), jnp.float32),   # Conv1D(D, D)
        "b_attn_proj": jnp.zeros((1, D), jnp.float32),
        "ln2_g": jnp.ones((1, D), jnp.float32),
        "ln2_b": jnp.zeros((1, D), jnp.float32),
        "w_fc": std * jax.random.normal(ks[2], (D, I), jnp.float32),          # Conv1D(I, D)
        "b_fc": jnp.zeros((1, I), jnp.float32),
        "w_mlp_proj": std * jax.random.normal(ks[3], (I, D), jnp.float32),    # Conv1D(D, I)
        "b_mlp_proj": jnp.zeros((1, D), jnp.float32),
    }


def reference_forward(x, p, *, n_head, eps=1e-5):
    B, T, D = x.shape
    hd = D // n_head

    def ln(h, g, b):
        mu = h.mean(-1, keepdims=True)
        var = ((h - mu) ** 2).mean(-1, keepdims=True)
        return (h - mu) / jnp.sqrt(var + eps) * g + b

    qkv = ln(x, p["ln1_g"], p["ln1_b"]) @ p["w_qkv"] + p["b_qkv"]
    q, k, v = jnp.split(qkv, 3, axis=-1)
    q = q.reshape(B, T, n_head, hd).transpose(0, 2, 1, 3)
    k = k.reshape(B, T, n_head, hd).transpose(0, 2, 3, 1)
    v = v.reshape(B, T, n_head, hd).transpose(0, 2, 1, 3)
    w = jnp.einsum("bhqd,bhdk->bhqk", q, k)
    mask = jnp.tril(jnp.ones((T, T), bool))
    w = jnp.where(mask[None, None], w, jnp.float32(_MASK_VALUE))
    w = jax.nn.softmax(w, axis=-1)
    a = jnp.einsum("bhqk,bhkd->bhqd", w, v).transpose(0, 2, 1, 3).reshape(B, T, D)
    a = a @ p["w_attn_proj"] + p["b_attn_proj"]
    h1 = x + a
    ff = ln(h1, p["ln2_g"], p["ln2_b"]) @ p["w_fc"] + p["b_fc"]
    ff = 0.5 * ff * (1.0 + jnp.tanh(math.sqrt(2.0 / math.pi) * (ff + 0.044715 * ff ** 3)))
    ff = ff @ p["w_mlp_proj"] + p["b_mlp_proj"]
    return h1 + ff


if __name__ == "__main__":
    B, T, D, H = 2, 8, 32, 4           # batch, seq (n_ctx), n_embd, n_head
    I = 4 * D                          # n_inner = 4 * hidden

    key = jax.random.PRNGKey(0)
    kx, kp = jax.random.split(key)
    x = jax.random.normal(kx, (B, T, D), jnp.float32)
    params = init_params(kp, D, I)
    prepared = prepare_params(params)  # one-time bf16 cast (not per forward)

    out = gpt2_block_forward(x, prepared, n_head=H)
    out = jax.block_until_ready(out)

    ref = reference_forward(x, params, n_head=H)
    assert out.shape == (B, T, D)
    # bf16 MXU operands / bf16 Q,K,V storage + approx softmax reciprocal -> slightly
    # looser tolerance vs the exact-f32 reference.
    assert jnp.allclose(out, ref, atol=2e-2, rtol=2e-2), "mismatch vs pure-JAX reference"

    print("KERNEL_OK")
</pallas_src>

<mosaic_0001>
module attributes {stable_mosaic.version = 11 : i64} {
  func.func @_qkv_kernel(%arg0: i32, %arg1: i32, %arg2: memref<1x8x32xf32, #tpu.memory_space<vmem>>, %arg3: memref<1x32xf32, #tpu.memory_space<vmem>>, %arg4: memref<1x32xf32, #tpu.memory_space<vmem>>, %arg5: memref<32x96xbf16, #tpu.memory_space<vmem>>, %arg6: memref<1x96xf32, #tpu.memory_space<vmem>>, %arg7: memref<1x4x8x8xbf16, #tpu.memory_space<vmem>>, %arg8: memref<1x4x8x8xbf16, #tpu.memory_space<vmem>>, %arg9: memref<1x4x8x8xbf16, #tpu.memory_space<vmem>>) attributes {dimension_semantics = [#tpu.dimension_semantics<parallel>, #tpu.dimension_semantics<parallel>], iteration_bounds = array<i64: 2, 1>, scalar_prefetch = 0 : i64, scratch_operands = 0 : i64, tpu.core_type = #tpu.core_type<tc>, window_params = [{transform_indices = @transform_0, window_bounds = array<i64: 1, 8, 32>}, {pipeline_mode = #tpu.pipeline_mode<synchronous>, transform_indices = @transform_1, window_bounds = array<i64: 1, 32>}, {pipeline_mode = #tpu.pipeline_mode<synchronous>, transform_indices = @transform_2, window_bounds = array<i64: 1, 32>}, {pipeline_mode = #tpu.pipeline_mode<synchronous>, transform_indices = @transform_3, window_bounds = array<i64: 32, 96>}, {pipeline_mode = #tpu.pipeline_mode<synchronous>, transform_indices = @transform_4, window_bounds = array<i64: 1, 96>}, {transform_indices = @transform_5, window_bounds = array<i64: 1, 4, 8, 8>}, {transform_indices = @transform_6, window_bounds = array<i64: 1, 4, 8, 8>}, {transform_indices = @transform_7, window_bounds = array<i64: 1, 4, 8, 8>}]} {
    %c0 = arith.constant 0 : index
    %c0_0 = arith.constant 0 : index
    %c0_1 = arith.constant 0 : index
    %0 = vector.load %arg2[%c0, %c0_0, %c0_1] : memref<1x8x32xf32, #tpu.memory_space<vmem>>, vector<1x8x32xf32>
    %1 = vector.shape_cast %0 : vector<1x8x32xf32> to vector<8x32xf32>
    %c0_2 = arith.constant 0 : index
    %c0_3 = arith.constant 0 : index
    %2 = vector.load %arg3[%c0_2, %c0_3] : memref<1x32xf32, #tpu.memory_space<vmem>>, vector<1x32xf32>
    %c0_4 = arith.constant 0 : index
    %c0_5 = arith.constant 0 : index
    %3 = vector.load %arg4[%c0_4, %c0_5] : memref<1x32xf32, #tpu.memory_space<vmem>>, vector<1x32xf32>
    %cst = arith.constant dense<0.000000e+00> : vector<8xf32>
    %4 = vector.multi_reduction <add>, %1, %cst [1] : vector<8x32xf32> to vector<8xf32>
    %5 = vector.shape_cast %4 : vector<8xf32> to vector<8x1xf32>
    %cst_6 = arith.constant 3.200000e+01 : f32
    %6 = vector.broadcast %cst_6 : f32 to vector<8x1xf32>
    %7 = arith.divf %5, %6 : vector<8x1xf32>
    %8 = vector.broadcast %7 : vector<8x1xf32> to vector<8x32xf32>
    %9 = arith.subf %1, %8 : vector<8x32xf32>
    %10 = arith.mulf %9, %9 : vector<8x32xf32>
    %cst_7 = arith.constant dense<0.000000e+00> : vector<8xf32>
    %11 = vector.multi_reduction <add>, %10, %cst_7 [1] : vector<8x32xf32> to vector<8xf32>
    %12 = vector.shape_cast %11 : vector<8xf32> to vector<8x1xf32>
    %cst_8 = arith.constant 3.200000e+01 : f32
    %13 = vector.broadcast %cst_8 : f32 to vector<8x1xf32>
    %14 = arith.divf %12, %13 : vector<8x1xf32>
    %15 = vector.broadcast %7 : vector<8x1xf32> to vector<8x32xf32>
    %16 = arith.subf %1, %15 : vector<8x32xf32>
    %cst_9 = arith.constant 9.99999974E-6 : f32
    %17 = vector.broadcast %cst_9 : f32 to vector<8x1xf32>
    %18 = arith.addf %14, %17 : vector<8x1xf32>
    %19 = math.rsqrt %18 : vector<8x1xf32>
    %20 = vector.broadcast %19 : vector<8x1xf32> to vector<8x32xf32>
    %21 = arith.mulf %16, %20 : vector<8x32xf32>
    %22 = vector.broadcast %2 : vector<1x32xf32> to vector<8x32xf32>
    %23 = arith.mulf %21, %22 : vector<8x32xf32>
    %24 = vector.broadcast %3 : vector<1x32xf32> to vector<8x32xf32>
    %25 = arith.addf %23, %24 : vector<8x32xf32>
    %26 = arith.truncf %25 : vector<8x32xf32> to vector<8x32xbf16>
    %c0_10 = arith.constant 0 : index
    %c0_11 = arith.constant 0 : index
    %27 = vector.load %arg5[%c0_10, %c0_11] : memref<32x96xbf16, #tpu.memory_space<vmem>>, vector<32x96xbf16>
    %cst_12 = arith.constant dense<0.000000e+00> : vector<8x96xf32>
    %28 = tpu.matmul %26, %27, %cst_12 {dimension_numbers = #tpu.dot_dimension_numbers<[1], [0], [0], [1], [0, 0, 1, 1], [], []>} : vector<8x32xbf16>, vector<32x96xbf16>, vector<8x96xf32> -> vector<8x96xf32>
    %c0_13 = arith.constant 0 : index
    %c0_14 = arith.constant 0 : index
    %29 = vector.load %arg6[%c0_13, %c0_14] : memref<1x96xf32, #tpu.memory_space<vmem>>, vector<1x96xf32>
    %30 = vector.broadcast %29 : vector<1x96xf32> to vector<8x96xf32>
    %31 = arith.addf %28, %30 : vector<8x96xf32>
    %32 = vector.extract_strided_slice %31 {offsets = [0, 0], sizes = [8, 32], strides = [1, 1]} : vector<8x96xf32> to vector<8x32xf32>
    %33 = vector.shape_cast %32 : vector<8x32xf32> to vector<8x4x8xf32>
    %34 = tpu.transpose %33, [1, 0, 2] : vector<8x4x8xf32> -> vector<4x8x8xf32>
    %35 = arith.truncf %34 : vector<4x8x8xf32> to vector<4x8x8xbf16>
    %c0_15 = arith.constant 0 : index
    %c0_16 = arith.constant 0 : index
    %c0_17 = arith.constant 0 : index
    %c0_18 = arith.constant 0 : index
    %36 = vector.load %arg7[%c0_15, %c0_16, %c0_17, %c0_18] : memref<1x4x8x8xbf16, #tpu.memory_space<vmem>>, vector<1x4x8x8xbf16>
    %37 = vector.shape_cast %36 : vector<1x4x8x8xbf16> to vector<4x8x8xbf16>
    %38 = vector.shape_cast %35 : vector<4x8x8xbf16> to vector<1x4x8x8xbf16>
    tpu.vector_store %arg7[%c0_15, %c0_16, %c0_17, %c0_18], %38 {strides = array<i32>} : memref<1x4x8x8xbf16, #tpu.memory_space<vmem>>, vector<1x4x8x8xbf16>,
    %39 = vector.extract_strided_slice %31 {offsets = [0, 32], sizes = [8, 32], strides = [1, 1]} : vector<8x96xf32> to vector<8x32xf32>
    %40 = vector.shape_cast %39 : vector<8x32xf32> to vector<8x4x8xf32>
    %41 = tpu.transpose %40, [1, 0, 2] : vector<8x4x8xf32> -> vector<4x8x8xf32>
    %42 = arith.truncf %41 : vector<4x8x8xf32> to vector<4x8x8xbf16>
    %c0_19 = arith.constant 0 : index
    %c0_20 = arith.constant 0 : index
    %c0_21 = arith.constant 0 : index
    %c0_22 = arith.constant 0 : index
    %43 = vector.load %arg8[%c0_19, %c0_20, %c0_21, %c0_22] : memref<1x4x8x8xbf16, #tpu.memory_space<vmem>>, vector<1x4x8x8xbf16>
    %44 = vector.shape_cast %43 : vector<1x4x8x8xbf16> to vector<4x8x8xbf16>
    %45 = vector.shape_cast %42 : vector<4x8x8xbf16> to vector<1x4x8x8xbf16>
    tpu.vector_store %arg8[%c0_19, %c0_20, %c0_21, %c0_22], %45 {strides = array<i32>} : memref<1x4x8x8xbf16, #tpu.memory_space<vmem>>, vector<1x4x8x8xbf16>,
    %46 = vector.extract_strided_slice %31 {offsets = [0, 64], sizes = [8, 32], strides = [1, 1]} : vector<8x96xf32> to vector<8x32xf32>
    %47 = vector.shape_cast %46 : vector<8x32xf32> to vector<8x4x8xf32>
    %48 = tpu.transpose %47, [1, 0, 2] : vector<8x4x8xf32> -> vector<4x8x8xf32>
    %49 = arith.truncf %48 : vector<4x8x8xf32> to vector<4x8x8xbf16>
    %c0_23 = arith.constant 0 : index
    %c0_24 = arith.constant 0 : index
    %c0_25 = arith.constant 0 : index
    %c0_26 = arith.constant 0 : index
    %50 = vector.load %arg9[%c0_23, %c0_24, %c0_25, %c0_26] : memref<1x4x8x8xbf16, #tpu.memory_space<vmem>>, vector<1x4x8x8xbf16>
    %51 = vector.shape_cast %50 : vector<1x4x8x8xbf16> to vector<4x8x8xbf16>
    %52 = vector.shape_cast %49 : vector<4x8x8xbf16> to vector<1x4x8x8xbf16>
    tpu.vector_store %arg9[%c0_23, %c0_24, %c0_25, %c0_26], %52 {strides = array<i32>} : memref<1x4x8x8xbf16, #tpu.memory_space<vmem>>, vector<1x4x8x8xbf16>,
    return
  }
  func.func @transform_0(%arg0: i32, %arg1: i32) -> (i32, i32, i32) {
    %c0_i32 = arith.constant 0 : i32
    %c0_i32_0 = arith.constant 0 : i32
    return %arg0, %arg1, %c0_i32 : i32, i32, i32
  }
  func.func @transform_1(%arg0: i32, %arg1: i32) -> (i32, i32) {
    %c0_i32 = arith.constant 0 : i32
    %c0_i32_0 = arith.constant 0 : i32
    %c0_i32_1 = arith.constant 0 : i32
    return %c0_i32, %c0_i32_0 : i32, i32
  }
  func.func @transform_2(%arg0: i32, %arg1: i32) -> (i32, i32) {
    %c0_i32 = arith.constant 0 : i32
    %c0_i32_0 = arith.constant 0 : i32
    %c0_i32_1 = arith.constant 0 : i32
    return %c0_i32, %c0_i32_0 : i32, i32
  }
  func.func @transform_3(%arg0: i32, %arg1: i32) -> (i32, i32) {
    %c0_i32 = arith.constant 0 : i32
    %c0_i32_0 = arith.constant 0 : i32
    %c0_i32_1 = arith.constant 0 : i32
    return %c0_i32, %c0_i32_0 : i32, i32
  }
  func.func @transform_4(%arg0: i32, %arg1: i32) -> (i32, i32) {
    %c0_i32 = arith.constant 0 : i32
    %c0_i32_0 = arith.constant 0 : i32
    %c0_i32_1 = arith.constant 0 : i32
    return %c0_i32, %c0_i32_0 : i32, i32
  }
  func.func @transform_5(%arg0: i32, %arg1: i32) -> (i32, i32, i32, i32) {
    %c0_i32 = arith.constant 0 : i32
    %c0_i32_0 = arith.constant 0 : i32
    %c0_i32_1 = arith.constant 0 : i32
    return %arg0, %c0_i32, %arg1, %c0_i32_0 : i32, i32, i32, i32
  }
  func.func @transform_6(%arg0: i32, %arg1: i32) -> (i32, i32, i32, i32) {
    %c0_i32 = arith.constant 0 : i32
    %c0_i32_0 = arith.constant 0 : i32
    %c0_i32_1 = arith.constant 0 : i32
    return %arg0, %c0_i32, %arg1, %c0_i32_0 : i32, i32, i32, i32
  }
  func.func @transform_7(%arg0: i32, %arg1: i32) -> (i32, i32, i32, i32) {
    %c0_i32 = arith.constant 0 : i32
    %c0_i32_0 = arith.constant 0 : i32
    %c0_i32_1 = arith.constant 0 : i32
    return %arg0, %c0_i32, %arg1, %c0_i32_0 : i32, i32, i32, i32
  }
}

</mosaic_0001>

<bundles_post_ra>
// kernel: tpu_custom_call.1
= control target key start
LH: loop header
LB: loop body
LE: loop exit
PB: predicated region body
PF: predicated region fallthrough
CT: control target
= control target key end

     0   :  { %s1881_s0 = inlined_call_operand.hbm [shape: f32[2,8,32], index: 0, kind: input, shape index: {}]   ;;  %s1882_s1 = inlined_call_operand.vmem [shape: f32[1,32], index: 1, kind: input, shape index: {}]   ;;  %s1883_s2 = inlined_call_operand.vmem [shape: f32[1,32], index: 2, kind: input, shape index: {}]   ;;  %s1884_s3 = inlined_call_operand.hbm [shape: bf16[32,96], index: 3, kind: input, shape index: {}]   ;;  %s1885_s4 = inlined_call_operand.vmem [shape: f32[1,96], index: 4, kind: input, shape index: {}]   ;;  %s1886_s5 = inlined_call_operand.hbm [shape: bf16[2,4,8,8], index: 5, kind: output, shape index: {0}]   ;;  %s1887_s6 = inlined_call_operand.hbm [shape: bf16[2,4,8,8], index: 6, kind: output, shape index: {1}]   ;;  %s1888_s7 = inlined_call_operand.hbm [shape: bf16[2,4,8,8], index: 7, kind: output, shape index: {2}]  }
   0x1   :  { %1894 = sst [smem:[#allocation18_spill]] %s1884_s3 }
   0x2   :  { %13 = vsyncpa [#allocation3], 0 }
   0x3   :  { %15 = vsyncpa [#allocation3 + $0x1], 0 }
   0x4   :  { %16 = vsyncpa [#allocation6], 0 }
   0x5   :  { %17 = vsyncpa [#allocation4], 0 }
   0x6   :  { %19 = vsyncpa [#allocation4 + $0x1], 0 }
   0x7   :  { %20 = vsyncpa [#allocation9], 0 }
   0x8   :  { %22 = vsyncpa [#allocation9 + $0x1], 0  ;;  %s1535_s24 = smov 0   ;;  %s1537_s25 = smov 0  }
   0x9   :  { %s1539_s26 = smov 0   ;;  %s1541_s27 = smov 0  }
   0xa   :  { %s1543_s28 = smov 0   ;;  %s1545_s29 = smov 0  }
   0xb LB: > { %1895 = sst [smem:[#allocation15_spill]] %s1472_s28  ;;  %s1566_s30 = sadd.s32 4294967295, %s1476_s29   ;;  %s1476_s29 = sphi %s1545_s29, %s28_s29   ;;  %s1472_s28 = sphi %s1543_s28, %s1914_s28   ;;  %s1468_s27 = sphi %s1541_s27, %s1913_s27   ;;  %s1464_s26 = sphi %s1539_s26, %s1917_s26   ;;  %s1460_s25 = sphi %s1537_s25, %s1916_s25   ;;  %s1456_s24 = sphi %s1535_s24, %s1915_s24  }
   0xc   : > { %s1889_s8 = sadd.s32 4294967294, %s1476_s29   ;;  %p62_p0 = scmp.ne.s32.totalorder %s1460_s25, %s1456_s24 }
   0xd   : > { %p1893_p1 = scmp.eq.s32.totalorder %s1566_s30, 0  ;;  %p178_p3 = scmp.eq.s32.totalorder %s1889_s8, 1 }
   0xe   : > { %p1135_p5 = scmp.ge.s32.totalorder %s1476_s29, 1  ;;  %p241_p7 = scmp.lt.s32.totalorder %s1476_s29, 3 }
   0xf   : > { %p1577_p4 = por %p1893_p1, %p62_p0  ;;  %p1582_p6 = por %p178_p3, %p62_p0 }
  0x10   : > { %p1587_p8 = pnand %p1135_p5, %p241_p7  ;;  %s1478_s12 = smov [#allocation5]  }
  0x11   : > { %s1897_s10 = scalar_select %p1582_p6, 1, 0 }
  0x12   : > { %s259_s13 = sshll.u32 %s1478_s12, 4  ;;  %p1195_p9 = pneg %p1587_p8  ;;  %s260_s13 = int_to_ptr.vmem [resolvable:$true] %s259_s13 }
  0x13   : > { %1898 = sst [smem:[#allocation16_spill]] %s1897_s10  ;;  %s40_s15 = sadd.s32 1, %s1472_s28 }
  0x14   : > { %p1596_p11 = pnand %p1195_p9, %p1893_p1  ;;  %s1293_s16 = scalar_lea.vmem %s260_s13, 256 }
  0x15   : > { %p1294_p13 = scmp.ne.s32.totalorder %s260_s13, %s1293_s16  ;;  %p1301_p5 = scmp.lt.s32.totalorder %s260_s13, %s260_s13 }
  0x16   : > { %p1284_p12 = pneg %p1596_p11  ;;  %p1302_p7 = scmp.lt.s32.totalorder %s1293_s16, %s1293_s16 }
  0x18   : > { %p1296_p0 = pnand %p1294_p13, %p1284_p12  ;;  %p1303_p2 = por %p1302_p7, %p1301_p5 }
  0x1a   : > { %p1297_p3 = pneg %p1296_p0 }
  0x1c   : > { %p1304_p6 = pnand %p1303_p2, %p1297_p3 }
  0x1e   : > { %1307 = shalt.err (!%p1304_p6)
}
  0x1f   : > { %s1479_s17 = smov 64   ;;  %s1480_s18 = smov 4  }
  0x20   : > { %s1901_s3 = sld [smem:[#allocation18_spill]]  ;;  %p42_p2 = scmp.ge.s32.totalorder %s40_s15, 2 }
  0x21   : > { %s49_s21 = sadd.s32 1, %s1464_s26  ;;  %p56_p6 = scmp.ne.s32.totalorder %s1464_s26, %s1460_s25 }
  0x22   : > { %p57_p9 = scmp.eq.s32.totalorder %s1476_s29, 0  ;;  %s1919_s15 = smov (%p42_p2, %s40_s15), 0 }
  0x23   : > { %1902 = sst [smem:[#allocation17_spill]] %s1919_s15  ;;  %p1904_p13 = scmp.eq.s32.totalorder %s1566_s30, 1 }
  0x24   : > { %p1614_p12 = por %p57_p9, %p56_p6  ;;  %s44_s12 = ssub.s32 %s1472_s28, %s1919_s15 }
  0x25   : > { %p1620_p0 = por %p1904_p13, %p56_p6  ;;  %p1214_p3 = scmp.lt.s32.totalorder %s1476_s29, 2 }
  0x26   : > { %1198 = dma.hbm_to_vmem [thread:$0]  (!%p1596_p11), %s1901_s3, 256, %s260_s13, [#allocation6], %s1479_s17, %s1479_s17, %s1480_s18  }
  0x27   : > { %p47_p11 = scmp.eq.s32.totalorder %s44_s12, 0  ;;  %s276_s13 = sand.u32 1, %s1464_s26  }
  0x28   : > { %s1138_s14 = sshll.u32 %s276_s13, 3  ;;  %s1139_s17 = sshll.u32 %s1472_s28, 7 }
  0x29   : > { %s1629_s16 = scalar_select %p47_p11, %s1464_s26, %s49_s21  }
  0x2a   : > { %s286_s20 = scalar_lea.hbm %s1881_s0, %s1139_s17  ;;  %s280_s8 = scalar_lea.vmem [#allocation2], %s1138_s14 }
  0x2b   : > { %s288_s3 = sshll.u32 %s280_s8, 4  ;;  %p1637_p5 = pnand %p1214_p3, %p1614_p12  ;;  %s289_s3 = int_to_ptr.vmem [resolvable:$true] %s288_s3 }
  0x2c   : > { %s277_s15 = scalar_lea.sflag [#allocation3], %s276_s13  ;;  %s1321_s12 = scalar_lea.vmem %s289_s3, 128 }
  0x2d   : > { %p1310_p7 = pneg %p1637_p5  ;;  %p1322_p2 = scmp.ne.s32.totalorder %s289_s3, %s1321_s12 }
  0x2e   : > { %s1481_s21 = smov [#allocation2]  }
  0x2f   : > { %p1324_p6 = pnand %p1322_p2, %p1310_p7  ;;  %s1326_s28 = sshll.u32 %s1481_s21, 4  ;;  %s1327_s28 = int_to_ptr.vmem [resolvable:$false] %s1326_s28 }
  0x30   : > { %s1328_s17 = scalar_lea.vmem %s1327_s28, 256  ;;  %p1329_p13 = scmp.lt.s32.totalorder %s289_s3, %s1327_s28 }
  0x31   : > { %p1325_p9 = pneg %p1324_p6  ;;  %p1330_p11 = scmp.lt.s32.totalorder %s1328_s17, %s1321_s12 }
  0x33   : > { %p1331_p10 = por %p1330_p11, %p1329_p13 }
  0x35   : > { %p1332_p1 = pnand %p1331_p10, %p1325_p9 }
  0x37   : > { %1335 = shalt.err (!%p1332_p1)
}
  0x38   : > { %1202 = dma.hbm_to_vmem [thread:$0]  (!%p1637_p5), %s286_s20, 128, %s289_s3, %s277_s15  }
  0x39   : > { %297 = sbr.rel (%p1587_p8) target bundleno = 868 (0x364), region = 40  ;;  %s1648_s8 = sand.u32 (!%p1587_p8), 1, %s1460_s25  }
  0x3a   : > { %s1141_s22 = sshll.u32 (!%p1587_p8), %s1648_s8, 3  ;;  %s300_s13 = scalar_lea.sflag (!%p1587_p8), [#allocation3], %s1648_s8 }
  0x3b   : > { %s303_s14 = scalar_lea.vmem (!%p1587_p8), [#allocation2], %s1141_s22 }
  0x3e   : > { %1439 = dma.done.wait (%p1577_p4), %s300_s13, 128  }
  0x3f   : > { %1441 = vsyncadd (%p1577_p4), %s300_s13, 4294967168  ;;  %p1907_p1 = scmp.eq.s32.totalorder %s1566_s30, 0 }
  0x41   : > { %1443 = dma.done.wait (%p1907_p1), [#allocation6], 256   ;;  %p1908_p10 = pmov %p1907_p1 }
  0x42   : > { %vm352_vm0 = vcmask 261120   ;;  %v349_v0 = vld [vmem:[%s303_s14] sm:$0xff]  ;;  %v1278_v7 = vld [vmem:[#allocation5 + $0x8] sm:$0xff]   ;;  %v1482_v8 = vmov 0.0   ;;  %vm1483_vm1 = vmmov 0   ;;  %v1279_v9 = vld [vmem:[#allocation5] sm:$0xff]   ;;  %v463_v28 = vlaneseq }
  0x43   : > { %1445 = vsyncadd (%p1908_p10), [#allocation6], 4294967040  ;;  %v353_v1 = vsel %vm352_vm0, %v349_v0, 0.0  ;;  %1175 = vmatprep.subr.bf16.mxu0 %v1482_v8  ;;  %1179 = vmatprep.mubr.msk.bf16.mxu0 %vm1483_vm1, %v1482_v8  ;;  %v1146_v14 = vld [vmem:[%s1882_s1] ss:$0 sm:$0xff]  ;;  %s1484_s18 = smov 104  }
  0x44   : > { %354 = vadd.xlane.f32.xlu0 %v353_v1  ;;  %1176 = vmatpush3.bf16.msra.mxu0 %v1278_v7  ;;  %v1147_v16 = vld [vmem:[%s1883_s2] ss:$0 sm:$0xff]  ;;  %s1485_s19 = smov 120   ;;  %s1486_s20 = smov 112   ;;  %v1489_v26 = vmov 1983009808  }
  0x45   : > { %1177 = vmatprep.subr.bf16.mxu0 %v1482_v8  ;;  %v1148_v20 = vld [vmem:[%s1885_s4] ss:$0 sm:$0xff]  ;;  %s1487_s12 = smov 96   ;;  %s1488_s21 = smov 64   ;;  %v461_v27 = vunpack.c.l.s4 %v1489_v26  ;;  %v1490_v29 = vmov 1934713408  }
  0x46   : > { %v493_v30 = vunpack.c.l.s4 %v1490_v29  ;;  %v464_v32 = vshrl.u32 %v463_v28, 7  ;;  %s1701_s17 = sshll.u32 %s1648_s8, 4  ;;  %vm598_vm2 = vcmask 60416   ;;  %s1704_s22 = sshll.u32 %s1468_s27, 8 }
  0x47   : > { %v462_v31 = vunpack.c.0.s8 %v461_v27  ;;  %s333_s13 = scalar_lea.vmem [#allocation7], %s1701_s17  ;;  %s1715_s28 = scalar_lea.hbm %s1886_s5, %s1704_s22 }
  0x48   : > { %1178 = vmatpush3.bf16.msra.mxu0 %v1279_v9  ;;  %v494_v35 = vunpack.c.0.s8 %v493_v30  ;;  %s940_s9 = sshll.u32 %s333_s13, 4  ;;  %s916_s27 = scalar_lea.sflag [#allocation4], %s1648_s8  ;;  %s1717_s9 = int_to_ptr.vmem [resolvable:$true] %s940_s9 }
  0x49   : > { %v1675_v36 = vsub.s32 %v462_v31, %v464_v32  ;;  %s1336_s10 = scalar_lea.vmem %s1717_s9, 256  ;;  %s1491_s11 = smov [#allocation7]  }
  0x4a   : > { %v1679_v42 = vsub.s32 %v494_v35, %v464_v32  ;;  %p1337_p4 = scmp.ne.s32.totalorder %s1717_s9, %s1336_s10  ;;  %s1340_s15 = sshll.u32 %s1491_s11, 4  ;;  %s1341_s15 = int_to_ptr.vmem [resolvable:$false] %s1340_s15 }
  0x4b   : > { %p1343_p3 = scmp.lt.s32.totalorder %s1717_s9, %s1341_s15 }
  0x4c   : > { %p1338_p8 = pnand %p1337_p4, %p1620_p0 }
  0x4e   : > { %p1339_p12 = pneg %p1338_p8 }
  0xcd   : > { %v355_v2 = vpop.xlane.xlu0 %354 }
  0xce   : > { %v357_v3 = vmul.f32 0.03125, %v355_v2 }
  0xd0   : > { %v358_v4 = vsub.f32 %v349_v0, %v357_v3 }
  0xd2   : > { %v359_v5 = vmul.f32 %v358_v4, %v358_v4 }
  0xd4   : > { %v360_v6 = vsel %vm352_vm0, %v359_v5, 0.0 }
  0xd5   : > { %361 = vadd.xlane.f32.xlu0 %v360_v6 }
 0x15e   : > { %v362_v10 = vpop.xlane.xlu0 %361 }
 0x15f   : > { %v363_v11 = vmul.f32 0.03125, %v362_v10 }
 0x161   : > { %v364_v12 = vadd.f32 1e-05, %v363_v11 }
 0x163   : > { %1280 = vrsqrt.f32 %v364_v12 }
 0x170   : > { %v1281_v13 = vpop.eup %1280 }
 0x171   : > { %v366_v15 = vmul.f32 %v1281_v13, %v358_v4 }
 0x173   : > { %v373_v17 = vmul.f32 %v1146_v14, %v366_v15 }
 0x175   : > { %v380_v18 = vadd.f32 %v1147_v16, %v373_v17 }
 0x177   : > { %v381_v19 = vpack.c.bf16 %v380_v18, %v380_v18 }
 0x179   : > { %1180 = vmatmul.mubr.msk.bf16.vlgmr.msra.gmra.mxu0 %vm352_vm0, %v381_v19 }
 0x239   : > { %v442_v21 = vpop.f32.mrf.mxu0 }
 0x23a   : > { %v443_v22 = vadd.f32 %v1148_v20, %v442_v21 }
 0x23b   : > { %v1181_v23 = vpop.f32.mrf.mxu0 }
 0x23c   : > { %455 = vrot.lane.b32.xlu0 %v443_v22, %s1484_s18  ;;  %449 = vrot.lane.b32.xlu1 %v443_v22, %s1485_s19  ;;  %s1342_s18 = scalar_lea.vmem %s1341_s15, 512 }
 0x23d   : > { %v445_v24 = vpop.f32.mrf.mxu0  ;;  %p1344_p5 = scmp.lt.s32.totalorder %s1342_s18, %s1336_s10 }
 0x23f   : > { %v1182_v25 = vpop.f32.mrf.mxu0  ;;  %p1345_p7 = por %p1344_p5, %p1343_p3 }
 0x240   : > { %452 = vrot.lane.b32.xlu1 %v443_v22, %s1486_s20 }
 0x241   : > { %p1346_p2 = pnand %p1345_p7, %p1339_p12 }
 0x244   : > { %603 = vrot.lane.b32.xlu1 %v443_v22, %s1487_s12 }
 0x248   : > { %759 = vrot.lane.b32.xlu1 %v443_v22, %s1488_s21 }
 0x2ae   : > { %v456_v33 = vpop.permute.xlu0 %455  ;;  %v450_v34 = vpop.permute.xlu1 %449 }
 0x2af   : > { %605 = vrot.lane.b32.xlu1 %v450_v34, %s1487_s12  ;;  %v474_v37 = vcombine.low %v450_v34, %v456_v33  ;;  %v475_v38 = vcombine.high %v450_v34, %v456_v33 }
 0x2b1   : > { %v482_v43 = vrot.slane %v474_v37, %v1675_v36  ;;  %v489_v44 = vrot.slane %v475_v38, %v1675_v36 }
 0x2b2   : > { %v453_v39 = vpop.permute.xlu1 %452 }
 0x2b3   : > { %v458_v40 = vcombine.low %v443_v22, %v453_v39  ;;  %v459_v41 = vcombine.high %v443_v22, %v453_v39  ;;  %763 = vrot.lane.b32.xlu0 %v453_v39, %s1488_s21  ;;  %607 = vrot.lane.b32.xlu1 %v453_v39, %s1487_s12 }
 0x2b5   : > { %v466_v45 = vrot.slane %v458_v40, %v1675_v36  ;;  %v473_v46 = vrot.slane %v459_v41, %v1675_v36 }
 0x2b7   : > { %v490_v47 = vcombine.low %v466_v45, %v482_v43  ;;  %v491_v48 = vcombine.high %v466_v45, %v482_v43  ;;  %v506_v49 = vcombine.low %v473_v46, %v489_v44  ;;  %v507_v50 = vcombine.high %v473_v46, %v489_v44  ;;  %609 = vrot.lane.b32.xlu1 %v456_v33, %s1487_s12 }
 0x2b9   : > { %v498_v51 = vrot.slane %v490_v47, %v1679_v42  ;;  %v505_v52 = vrot.slane %v491_v48, %v1679_v42  ;;  %v514_v53 = vrot.slane %v506_v49, %v1679_v42  ;;  %v521_v54 = vrot.slane %v507_v50, %v1679_v42 }
 0x2bb   : > { %v526_v55 = vcombine.low %v498_v51, %v505_v52  ;;  %v1152_v56 = vcombine.high %v498_v51, %v505_v52  ;;  %v542_v57 = vcombine.low %v514_v53, %v521_v54  ;;  %v1153_v58 = vcombine.high %v514_v53, %v521_v54  ;;  %761 = vrot.lane.b32.xlu1 %v450_v34, %s1488_s21 }
 0x2bd   : > { %v533_v59 = vrot.slane %v526_v55, %v1675_v36  ;;  %v541_v60 = vrot.slane %v1152_v56, %v1675_v36  ;;  %v549_v61 = vrot.slane %v542_v57, %v1675_v36  ;;  %v557_v62 = vrot.slane %v1153_v58, %v1675_v36 }
 0x2bf   : > { %v558_v63 = vcombine.low %v533_v59, %v541_v60  ;;  %v559_v0 = vcombine.high %v533_v59, %v541_v60  ;;  %v574_v1 = vcombine.low %v549_v61, %v557_v62  ;;  %v575_v2 = vcombine.high %v549_v61, %v557_v62  ;;  %765 = vrot.lane.b32.xlu1 %v456_v33, %s1488_s21 }
 0x2c1   : > { %v566_v3 = vrot.slane %v558_v63, %v1679_v42  ;;  %v573_v4 = vrot.slane %v559_v0, %v1679_v42  ;;  %v582_v5 = vrot.slane %v574_v1, %v1679_v42  ;;  %v589_v6 = vrot.slane %v575_v2, %v1679_v42 }
 0x2c3   : > { %v590_v7 = vcombine.low %v566_v3, %v582_v5  ;;  %v591_v8 = vcombine.high %v566_v3, %v582_v5  ;;  %v592_v9 = vcombine.low %v573_v4, %v589_v6  ;;  %v593_v10 = vcombine.high %v573_v4, %v589_v6 }
 0x2c5   : > { %v594_v11 = vpack.c.bf16 %v590_v7, %v590_v7  ;;  %v595_v12 = vpack.c.bf16 %v591_v8, %v591_v8  ;;  %v596_v13 = vpack.c.bf16 %v592_v9, %v592_v9  ;;  %v597_v14 = vpack.c.bf16 %v593_v10, %v593_v10 }
 0x2c7   : > { %599 = vst.msk [vmem:[%s333_s13] sm:$0xf] %vm598_vm2, %v594_v11  ;;  %600 = vst.msk [vmem:[%s333_s13 + $0x4] sm:$0xf] %vm598_vm2, %v595_v12 }
 0x2c8   : > { %601 = vst.msk [vmem:[%s333_s13 + $0x8] sm:$0xf] %vm598_vm2, %v596_v13  ;;  %602 = vst.msk [vmem:[%s333_s13 + $0xc] sm:$0xf] %vm598_vm2, %v597_v14 }
 0x2c9   : > { %1349 = shalt.err (!%p1346_p2)
}
 0x2ca   : > { %s1350_s19 = scalar_lea.hbm %s1715_s28, 256  ;;  %s1354_s13 = scalar_lea.hbm %s1886_s5, 512 }
 0x2cb   : > { %p1351_p6 = scmp.ne.s32.totalorder %s1715_s28, %s1350_s19  ;;  %p1355_p11 = scmp.lt.s32.totalorder %s1715_s28, %s1886_s5 }
 0x2cc   : > { %p1356_p1 = scmp.lt.s32.totalorder %s1354_s13, %s1350_s19 }
 0x2cd   : > { %p1352_p9 = pnand %p1351_p6, %p1620_p0 }
 0x2ce   : > { %p1357_p10 = por %p1356_p1, %p1355_p11 }
 0x2cf   : > { %p1353_p13 = pneg %p1352_p9 }
 0x2d1   : > { %p1358_p4 = pnand %p1357_p10, %p1353_p13 }
 0x2d3   : > { %1361 = shalt.err (!%p1358_p4)
}
 0x2d4   : > { %s1492_s10 = smov 4   ;;  %v604_v15 = vpop.permute.xlu1 %603  ;;  %s920_s8 = sand.u32 1, %s1566_s30  }
 0x2d5   : > { %1189 = dma.vmem_to_hbm [thread:$0]  (%p1620_p0), %s1717_s9, 256, %s1715_s28, %s916_s27, %s1488_s21, %s1488_s21, %s1492_s10  }
 0x2d6   : > { %s340_s28 = scalar_lea.vmem [#allocation8], %s1701_s17  ;;  %s1775_s15 = scalar_lea.hbm %s1887_s6, %s1704_s22 }
 0x2d7   : > { %s957_s9 = sshll.u32 %s340_s28, 4  ;;  %s1789_s18 = scalar_lea.sflag [#allocation9], %s920_s8  ;;  %s1777_s9 = int_to_ptr.vmem [resolvable:$true] %s957_s9 }
 0x2d8   : > { %v760_v16 = vpop.permute.xlu1 %759  ;;  %s1362_s19 = scalar_lea.vmem %s1777_s9, 256  ;;  %s1493_s20 = smov [#allocation8]  }
 0x2d9   : > { %p1363_p8 = scmp.ne.s32.totalorder %s1777_s9, %s1362_s19  ;;  %s1366_s12 = sshll.u32 %s1493_s20, 4  ;;  %s1367_s12 = int_to_ptr.vmem [resolvable:$false] %s1366_s12 }
 0x2da   : > { %s1368_s13 = scalar_lea.vmem %s1367_s12, 512  ;;  %p1369_p5 = scmp.lt.s32.totalorder %s1777_s9, %s1367_s12 }
 0x2db   : > { %p1364_p12 = pnand %p1363_p8, %p1620_p0  ;;  %p1370_p7 = scmp.lt.s32.totalorder %s1368_s13, %s1362_s19 }
 0x2dd   : > { %p1365_p3 = pneg %p1364_p12  ;;  %p1371_p2 = por %p1370_p7, %p1369_p5 }
 0x2df   : > { %p1372_p6 = pnand %p1371_p2, %p1365_p3 }
 0x321   : > { %v606_v17 = vpop.permute.xlu1 %605 }
 0x325   : > { %v608_v18 = vpop.permute.xlu1 %607  ;;  %v764_v29 = vpop.permute.xlu0 %763 }
 0x326   : > { %v615_v19 = vcombine.low %v604_v15, %v608_v18  ;;  %v616_v20 = vcombine.high %v604_v15, %v608_v18  ;;  %v771_v39 = vcombine.low %v760_v16, %v764_v29  ;;  %v772_v40 = vcombine.high %v760_v16, %v764_v29 }
 0x328   : > { %v623_v24 = vrot.slane %v615_v19, %v1675_v36  ;;  %v630_v25 = vrot.slane %v616_v20, %v1675_v36  ;;  %v779_v53 = vrot.slane %v771_v39, %v1675_v36  ;;  %v786_v54 = vrot.slane %v772_v40, %v1675_v36 }
 0x329   : > { %v610_v21 = vpop.permute.xlu1 %609 }
 0x32a   : > { %v631_v22 = vcombine.low %v606_v17, %v610_v21  ;;  %v632_v23 = vcombine.high %v606_v17, %v610_v21 }
 0x32c   : > { %v639_v26 = vrot.slane %v631_v22, %v1675_v36  ;;  %v646_v27 = vrot.slane %v632_v23, %v1675_v36 }
 0x32d   : > { %v762_v28 = vpop.permute.xlu1 %761 }
 0x32e   : > { %v647_v30 = vcombine.low %v623_v24, %v639_v26  ;;  %v648_v31 = vcombine.high %v623_v24, %v639_v26  ;;  %v663_v32 = vcombine.low %v630_v25, %v646_v27  ;;  %v664_v33 = vcombine.high %v630_v25, %v646_v27 }
 0x330   : > { %v655_v34 = vrot.slane %v647_v30, %v1679_v42  ;;  %v662_v35 = vrot.slane %v648_v31, %v1679_v42  ;;  %v671_v37 = vrot.slane %v663_v32, %v1679_v42  ;;  %v678_v38 = vrot.slane %v664_v33, %v1679_v42 }
 0x331   : > { %v766_v41 = vpop.permute.xlu1 %765 }
 0x332   : > { %v683_v43 = vcombine.low %v655_v34, %v662_v35  ;;  %v1154_v44 = vcombine.high %v655_v34, %v662_v35  ;;  %v699_v45 = vcombine.low %v671_v37, %v678_v38  ;;  %v1155_v46 = vcombine.high %v671_v37, %v678_v38 }
 0x333   : > { %v787_v47 = vcombine.low %v762_v28, %v766_v41  ;;  %v788_v48 = vcombine.high %v762_v28, %v766_v41 }
 0x334   : > { %v690_v49 = vrot.slane %v683_v43, %v1675_v36  ;;  %v698_v50 = vrot.slane %v1154_v44, %v1675_v36  ;;  %v706_v51 = vrot.slane %v699_v45, %v1675_v36  ;;  %v714_v52 = vrot.slane %v1155_v46, %v1675_v36 }
 0x335   : > { %v795_v55 = vrot.slane %v787_v47, %v1675_v36  ;;  %v802_v56 = vrot.slane %v788_v48, %v1675_v36 }
 0x336   : > { %v715_v57 = vcombine.low %v690_v49, %v698_v50  ;;  %v716_v58 = vcombine.high %v690_v49, %v698_v50  ;;  %v731_v59 = vcombine.low %v706_v51, %v714_v52  ;;  %v732_v60 = vcombine.high %v706_v51, %v714_v52 }
 0x337   : > { %v803_v61 = vcombine.low %v779_v53, %v795_v55  ;;  %v804_v62 = vcombine.high %v779_v53, %v795_v55  ;;  %v819_v63 = vcombine.low %v786_v54, %v802_v56  ;;  %v820_v0 = vcombine.high %v786_v54, %v802_v56 }
 0x338   : > { %v723_v1 = vrot.slane %v715_v57, %v1679_v42  ;;  %v730_v2 = vrot.slane %v716_v58, %v1679_v42  ;;  %v739_v3 = vrot.slane %v731_v59, %v1679_v42  ;;  %v746_v4 = vrot.slane %v732_v60, %v1679_v42 }
 0x339   : > { %v811_v5 = vrot.slane %v803_v61, %v1679_v42  ;;  %v818_v6 = vrot.slane %v804_v62, %v1679_v42  ;;  %v827_v7 = vrot.slane %v819_v63, %v1679_v42  ;;  %v834_v8 = vrot.slane %v820_v0, %v1679_v42 }
 0x33a   : > { %v747_v9 = vcombine.low %v723_v1, %v739_v3  ;;  %v748_v10 = vcombine.high %v723_v1, %v739_v3  ;;  %v749_v11 = vcombine.low %v730_v2, %v746_v4  ;;  %v750_v12 = vcombine.high %v730_v2, %v746_v4 }
 0x33b   : > { %v839_v13 = vcombine.low %v811_v5, %v818_v6  ;;  %v1156_v14 = vcombine.high %v811_v5, %v818_v6  ;;  %v855_v15 = vcombine.low %v827_v7, %v834_v8  ;;  %v1157_v16 = vcombine.high %v827_v7, %v834_v8 }
 0x33c   : > { %v751_v17 = vpack.c.bf16 %v747_v9, %v747_v9  ;;  %v752_v18 = vpack.c.bf16 %v748_v10, %v748_v10  ;;  %v753_v19 = vpack.c.bf16 %v749_v11, %v749_v11  ;;  %v754_v20 = vpack.c.bf16 %v750_v12, %v750_v12 }
 0x33d   : > { %v846_v21 = vrot.slane %v839_v13, %v1675_v36  ;;  %v854_v22 = vrot.slane %v1156_v14, %v1675_v36  ;;  %v862_v23 = vrot.slane %v855_v15, %v1675_v36  ;;  %v870_v24 = vrot.slane %v1157_v16, %v1675_v36 }
 0x33e   : > { %755 = vst.msk [vmem:[%s340_s28] sm:$0xf] %vm598_vm2, %v751_v17  ;;  %756 = vst.msk [vmem:[%s340_s28 + $0x4] sm:$0xf] %vm598_vm2, %v752_v18 }
 0x33f   : > { %757 = vst.msk [vmem:[%s340_s28 + $0x8] sm:$0xf] %vm598_vm2, %v753_v19  ;;  %758 = vst.msk [vmem:[%s340_s28 + $0xc] sm:$0xf] %vm598_vm2, %v754_v20  ;;  %v871_v25 = vcombine.low %v846_v21, %v854_v22  ;;  %v872_v26 = vcombine.high %v846_v21, %v854_v22  ;;  %v887_v27 = vcombine.low %v862_v23, %v870_v24 }
 0x340   : > { %v888_v28 = vcombine.high %v862_v23, %v870_v24 }
 0x341   : > { %1375 = shalt.err (!%p1372_p6)
}
 0x342   : > { %s1376_s30 = scalar_lea.hbm %s1775_s15, 256  ;;  %s1380_s8 = scalar_lea.hbm %s1887_s6, 512 }
 0x343   : > { %p1377_p9 = scmp.ne.s32.totalorder %s1775_s15, %s1376_s30  ;;  %p1381_p1 = scmp.lt.s32.totalorder %s1775_s15, %s1887_s6 }
 0x344   : > { %p1382_p10 = scmp.lt.s32.totalorder %s1380_s8, %s1376_s30 }
 0x345   : > { %p1378_p13 = pnand %p1377_p9, %p1620_p0 }
 0x346   : > { %p1383_p4 = por %p1382_p10, %p1381_p1 }
 0x347   : > { %p1379_p11 = pneg %p1378_p13 }
 0x349   : > { %p1384_p8 = pnand %p1383_p4, %p1379_p11 }
 0x34b   : > { %1387 = shalt.err (!%p1384_p8)
}
 0x34c   : > { %1190 = dma.vmem_to_hbm [thread:$0]  (%p1620_p0), %s1777_s9, 256, %s1775_s15, %s1789_s18, %s1488_s21, %s1488_s21, %s1492_s10   ;;  %v879_v36 = vrot.slane %v871_v25, %v1679_v42  ;;  %v886_v29 = vrot.slane %v872_v26, %v1679_v42  ;;  %v895_v30 = vrot.slane %v887_v27, %v1679_v42  ;;  %v902_v31 = vrot.slane %v888_v28, %v1679_v42 }
 0x34d   : > { %s347_s11 = scalar_lea.vmem [#allocation10], %s1701_s17  ;;  %s1824_s20 = scalar_lea.hbm %s1888_s7, %s1704_s22 }
 0x34e   : > { %s974_s19 = sshll.u32 %s347_s11, 4  ;;  %v903_v32 = vcombine.low %v879_v36, %v895_v30  ;;  %v904_v33 = vcombine.high %v879_v36, %v895_v30  ;;  %v905_v34 = vcombine.low %v886_v29, %v902_v31  ;;  %v906_v35 = vcombine.high %v886_v29, %v902_v31  ;;  %s1494_s22 = smov [#allocation10]   ;;  %s1826_s19 = int_to_ptr.vmem [resolvable:$true] %s974_s19 }
 0x34f   : > { %s1388_s17 = scalar_lea.vmem %s1826_s19, 256  ;;  %s1392_s12 = sshll.u32 %s1494_s22, 4  ;;  %s1393_s12 = int_to_ptr.vmem [resolvable:$false] %s1392_s12 }
 0x350   : > { %v907_v37 = vpack.c.bf16 %v903_v32, %v903_v32  ;;  %v908_v38 = vpack.c.bf16 %v904_v33, %v904_v33  ;;  %v909_v39 = vpack.c.bf16 %v905_v34, %v905_v34  ;;  %v910_v40 = vpack.c.bf16 %v906_v35, %v906_v35  ;;  %p1389_p12 = scmp.ne.s32.totalorder %s1826_s19, %s1388_s17  ;;  %s1394_s13 = scalar_lea.vmem %s1393_s12, 512 }
 0x351   : > { %p1395_p7 = scmp.lt.s32.totalorder %s1826_s19, %s1393_s12  ;;  %p1396_p2 = scmp.lt.s32.totalorder %s1394_s13, %s1388_s17 }
 0x352   : > { %911 = vst.msk [vmem:[%s347_s11] sm:$0xf] %vm598_vm2, %v907_v37  ;;  %912 = vst.msk [vmem:[%s347_s11 + $0x4] sm:$0xf] %vm598_vm2, %v908_v38  ;;  %p1390_p3 = pnand %p1389_p12, %p1620_p0 }
 0x353   : > { %913 = vst.msk [vmem:[%s347_s11 + $0x8] sm:$0xf] %vm598_vm2, %v909_v39  ;;  %914 = vst.msk [vmem:[%s347_s11 + $0xc] sm:$0xf] %vm598_vm2, %v910_v40  ;;  %p1397_p6 = por %p1396_p2, %p1395_p7 }
 0x354   : > { %p1391_p5 = pneg %p1390_p3 }
 0x356   : > { %p1398_p9 = pnand %p1397_p6, %p1391_p5 }
 0x358   : > { %1401 = shalt.err (!%p1398_p9)
}
 0x359   : > { %s1402_s30 = scalar_lea.hbm %s1824_s20, 256  ;;  %s1406_s8 = scalar_lea.hbm %s1888_s7, 512 }
 0x35a   : > { %p1403_p13 = scmp.ne.s32.totalorder %s1824_s20, %s1402_s30  ;;  %p1407_p10 = scmp.lt.s32.totalorder %s1824_s20, %s1888_s7 }
 0x35b   : > { %p1408_p4 = scmp.lt.s32.totalorder %s1406_s8, %s1402_s30 }
 0x35c   : > { %p1404_p11 = pnand %p1403_p13, %p1620_p0 }
 0x35d   : > { %p1409_p8 = por %p1408_p4, %p1407_p10 }
 0x35e   : > { %p1405_p1 = pneg %p1404_p11 }
 0x360   : > { %p1410_p12 = pnand %p1409_p8, %p1405_p1 }
 0x362   : > { %1413 = shalt.err (!%p1410_p12)
}
 0x363   : > { %1191 = dma.vmem_to_hbm [thread:$0]  (%p1620_p0), %s1826_s19, 256, %s1824_s20, %s1789_s18, %s1488_s21, %s1488_s21, %s1492_s10  }
 0x364 PF: > { %s1909_s11 = sld [smem:[#allocation16_spill]]  ;;  %s989_s9 = sand.u32 1, %s1456_s24  }
 0x365   : > { %p1911_p5 = scmp.ge.s32.totalorder %s1476_s29, 2  ;;  %s990_s15 = scalar_lea.sflag [#allocation4], %s989_s9 }
 0x36a   : > { %p1910_p3 = scmp.ne.s32.totalorder %s1909_s11, 0 }
 0x36c   : > { %p1204_p7 = pnand %p1911_p5, %p1910_p3 }
 0x36e   : > { %p1205_p2 = pneg %p1204_p7 }
 0x370   : > { %1447 = dma.done.wait (%p1205_p2), %s990_s15, 256  }
 0x371   : > { %1449 = vsyncadd (%p1205_p2), %s990_s15, 4294967040  ;;  %s1912_s23 = sadd.s32 4294967294, %s1476_s29  }
 0x372   : > { %s998_s17 = sand.u32 1, %s1912_s23  }
 0x373   : > { %s999_s22 = scalar_lea.sflag [#allocation9], %s998_s17 }
 0x374   : > { %1451 = dma.done.wait (%p1205_p2), %s999_s22, 512  }
 0x375   : > { %1453 = vsyncadd (%p1205_p2), %s999_s22, 4294966784  ;;  %s28_s29 = sadd.s32 1, %s1476_s29   ;;  %s1913_s27 = sld [smem:[#allocation15_spill]] }
 0x376   : > { %p25_p0 = scmp.ge.s32.totalorder %s28_s29, 4   ;;  %s1914_s28 = sld [smem:[#allocation17_spill]] }
 0x377   : > { %s1915_s24 = smov %s1460_s25  ;;  %s1916_s25 = smov %s1464_s26 }
 0x378   : > { %s1917_s26 = smov %s1629_s16  ;;  %27 = sbr.rel (!%p25_p0) target bundleno = 11 (0xb), region = 121 }
 0x37d   :  { %1013 = vsyncpa [#allocation3], 1 }
 0x37e   :  { %1015 = vsyncpa [#allocation3 + $0x1], 1 }
 0x37f   :  { %1016 = vsyncpa [#allocation6], 1 }
 0x380   :  { %1017 = vsyncpa [#allocation4], 1 }
 0x381   :  { %1019 = vsyncpa [#allocation4 + $0x1], 1 }
 0x382   :  { %1020 = vsyncpa [#allocation9], 1 }
 0x383   :  { %1022 = vsyncpa [#allocation9 + $0x1], 1 }

</bundles_post_ra>
